<compile_context>
chip_gen: v7x
topology: tpu7x:2x2x1
jax: 0.10.0
libtpu: 0.0.40
codegen_flags: <defaults>
</compile_context>

<pallas_src>
import jax
import jax.numpy as jnp
import numpy as np
from jax.experimental import pallas as pl
from jax.experimental.pallas import tpu as pltpu


def _iou_partial_kernel(x_ref, t_ref, inter_ref, total_ref):
    # x_ref / t_ref: (1, 1, TR, L) input blocks.
    # inter_ref / total_ref: (1, 1, 1, L) accumulators, resident across the
    # innermost ("arbitrary") row-tile axis.
    @pl.when(pl.program_id(2) == 0)
    def _init():
        inter_ref[...] = jnp.zeros_like(inter_ref)
        total_ref[...] = jnp.zeros_like(total_ref)

    x = x_ref[0, 0].astype(jnp.float32)          # (TR, L)
    t = t_ref[0, 0].astype(jnp.float32)          # (TR, L)
    # Elementwise VPU work + sublane-only reduction; lanes stay live so the
    # per-tile compute is cheap filler hidden under the DMA.
    inter_ref[0, 0] += jnp.sum(x * t, axis=0, keepdims=True)
    total_ref[0, 0] += jnp.sum(x + t, axis=0, keepdims=True)


def _pick_block_rows(rows, lanes, max_block_elems=512 * 1024):
    """Largest row tile that divides `rows`, is a multiple of 8 (or == rows),
    and keeps one block under ~max_block_elems elements (~2 MiB f32)."""
    if rows * lanes <= max_block_elems:
        return rows
    cap = min(rows, max(8, max_block_elems // max(lanes, 1)))
    d = (cap // 8) * 8
    while d >= 8:
        if rows % d == 0:
            return d
        d -= 8
    # TODO(synk): ragged tiles (no clean divisor) could use an in-kernel iota
    # mask instead of falling back to a single full-height block.
    return rows


@jax.jit
def _iou_device(inputs, targets, smooth):
    B, C, H, W = inputs.shape
    Cf = C - 1
    assert targets.shape == (B, Cf, H, W), (inputs.shape, targets.shape)

    if Cf == 0:                       # no foreground channels: (0+s)/(0-0+s)
        return jnp.float32(1.0)

    # Keep floating dtypes as-is (bf16 stays bf16 in HBM, upcast in-kernel);
    # only non-float (bool/int) masks get a small wrapper-side cast.
    if not jnp.issubdtype(inputs.dtype, jnp.floating):
        inputs = inputs.astype(jnp.float32)
    if not jnp.issubdtype(targets.dtype, jnp.floating):
        targets = targets.astype(jnp.float32)

    # Lane-dense view of each spatial plane when possible (free reshapes of
    # contiguous arrays; no HBM copies either way).
    HW = H * W
    if HW % 128 == 0:
        R, L = HW // 128, 128
    else:
        R, L = H, W
    x = inputs.reshape(B, C, R, L)
    t = targets.reshape(B, Cf, R, L)

    TR = _pick_block_rows(R, L)
    grid = (B, Cf, R // TR)

    inter_part, total_part = pl.pallas_call(
        _iou_partial_kernel,
        out_shape=(
            jax.ShapeDtypeStruct((B, Cf, 1, L), jnp.float32),
            jax.ShapeDtypeStruct((B, Cf, 1, L), jnp.float32),
        ),
        grid=grid,
        in_specs=[
            # Channel drop folded into the index_map: foreground c -> c + 1.
            pl.BlockSpec((1, 1, TR, L), lambda b, c, r: (b, c + 1, r, 0)),
            pl.BlockSpec((1, 1, TR, L), lambda b, c, r: (b, c, r, 0)),
        ],
        out_specs=(
            pl.BlockSpec((1, 1, 1, L), lambda b, c, r: (b, c, 0, 0)),
            pl.BlockSpec((1, 1, 1, L), lambda b, c, r: (b, c, 0, 0)),
        ),
        compiler_params=pltpu.CompilerParams(
            dimension_semantics=("parallel", "parallel", "arbitrary")),
    )(x, t)

    # Tiny epilogue: combine partials (a few KiB) and apply the IoU formula.
    inter = jnp.sum(inter_part)
    total = jnp.sum(total_part)
    smooth = jnp.asarray(smooth, jnp.float32)
    return (inter + smooth) / (total - inter + smooth)


def iou_score(inputs, targets, smooth=1.0):
    """Matches IoUScore.forward; returns a host scalar (mirrors .cpu().numpy())."""
    return np.asarray(_iou_device(inputs, targets, smooth))


def _iou_reference(inputs, targets, smooth=1.0):
    x = inputs[:, 1:].reshape(-1).astype(jnp.float32)
    t = targets.reshape(-1).astype(jnp.float32)
    inter = jnp.sum(x * t)
    total = jnp.sum(x + t)
    return (inter + smooth) / (total - inter + smooth)


if __name__ == "__main__":
    key = jax.random.PRNGKey(0)
    k1, k2, k3, k4 = jax.random.split(key, 4)

    # Case 1: B=2, C=4 classes (channel 0 = background), 16x16 spatial
    # (H*W divisible by 128 -> lane-dense path).
    B, C, H, W = 2, 4, 16, 16
    logits = jax.random.normal(k1, (B, C, H, W), dtype=jnp.float32)
    inputs = jax.nn.softmax(logits, axis=1)
    targets = (jax.random.uniform(k2, (B, C - 1, H, W)) > 0.5).astype(jnp.float32)

    iou_dev = _iou_device(inputs, targets, 1.0)
    jax.block_until_ready(iou_dev)
    iou = np.asarray(iou_dev)
    ref = np.asarray(_iou_reference(inputs, targets, smooth=1.0))
    assert np.allclose(iou, ref, rtol=1e-5, atol=1e-6), (iou, ref)

    # Case 2: spatial plane not divisible by 128 (exercises the (H, W) layout).
    B2, C2, H2, W2 = 2, 3, 24, 24
    logits2 = jax.random.normal(k3, (B2, C2, H2, W2), dtype=jnp.float32)
    inputs2 = jax.nn.softmax(logits2, axis=1)
    targets2 = (jax.random.uniform(k4, (B2, C2 - 1, H2, W2)) > 0.5).astype(jnp.float32)

    iou2 = iou_score(inputs2, targets2, smooth=1.0)
    ref2 = np.asarray(_iou_reference(inputs2, targets2, smooth=1.0))
    assert np.allclose(iou2, ref2, rtol=1e-5, atol=1e-6), (iou2, ref2)

    print("KERNEL_OK")
</pallas_src>

<mosaic_0001>
module attributes {stable_mosaic.version = 11 : i64} {
  func.func @_iou_partial_kernel(%arg0: i32, %arg1: i32, %arg2: i32, %arg3: memref<1x1x2x128xf32, #tpu.memory_space<vmem>>, %arg4: memref<1x1x2x128xf32, #tpu.memory_space<vmem>>, %arg5: memref<1x1x1x128xf32, #tpu.memory_space<vmem>>, %arg6: memref<1x1x1x128xf32, #tpu.memory_space<vmem>>) attributes {dimension_semantics = [#tpu.dimension_semantics<parallel>, #tpu.dimension_semantics<parallel>, #tpu.dimension_semantics<arbitrary>], iteration_bounds = array<i64: 2, 3, 1>, scalar_prefetch = 0 : i64, scratch_operands = 0 : i64, tpu.core_type = #tpu.core_type<tc>, window_params = [{transform_indices = @transform_0, window_bounds = array<i64: 1, 1, 2, 128>}, {transform_indices = @transform_1, window_bounds = array<i64: 1, 1, 2, 128>}, {transform_indices = @transform_2, window_bounds = array<i64: 1, 1, 1, 128>}, {transform_indices = @transform_3, window_bounds = array<i64: 1, 1, 1, 128>}]} {
    %c0_i32 = arith.constant 0 : i32
    %0 = arith.cmpi eq, %arg2, %c0_i32 : i32
    %1 = arith.extui %0 : i1 to i32
    %c0_i32_0 = arith.constant 0 : i32
    %2 = arith.cmpi ne, %1, %c0_i32_0 : i32
    scf.if %2 {
      %cst_25 = arith.constant 0.000000e+00 : f32
      %25 = vector.broadcast %cst_25 : f32 to vector<1x1x1x128xf32>
      %c0_26 = arith.constant 0 : index
      %c0_27 = arith.constant 0 : index
      %c0_28 = arith.constant 0 : index
      %c0_29 = arith.constant 0 : index
      %26 = vector.load %arg5[%c0_26, %c0_27, %c0_28, %c0_29] : memref<1x1x1x128xf32, #tpu.memory_space<vmem>>, vector<1x1x1x128xf32>
      tpu.vector_store %arg5[%c0_26, %c0_27, %c0_28, %c0_29], %25 {strides = array<i32>} : memref<1x1x1x128xf32, #tpu.memory_space<vmem>>, vector<1x1x1x128xf32>,
      %cst_30 = arith.constant 0.000000e+00 : f32
      %27 = vector.broadcast %cst_30 : f32 to vector<1x1x1x128xf32>
      %c0_31 = arith.constant 0 : index
      %c0_32 = arith.constant 0 : index
      %c0_33 = arith.constant 0 : index
      %c0_34 = arith.constant 0 : index
      %28 = vector.load %arg6[%c0_31, %c0_32, %c0_33, %c0_34] : memref<1x1x1x128xf32, #tpu.memory_space<vmem>>, vector<1x1x1x128xf32>
      tpu.vector_store %arg6[%c0_31, %c0_32, %c0_33, %c0_34], %27 {strides = array<i32>} : memref<1x1x1x128xf32, #tpu.memory_space<vmem>>, vector<1x1x1x128xf32>,
    } else {
    }
    %c0 = arith.constant 0 : index
    %c0_1 = arith.constant 0 : index
    %c0_2 = arith.constant 0 : index
    %c0_3 = arith.constant 0 : index
    %3 = vector.load %arg3[%c0, %c0_1, %c0_2, %c0_3] : memref<1x1x2x128xf32, #tpu.memory_space<vmem>>, vector<1x1x2x128xf32>
    %4 = vector.shape_cast %3 : vector<1x1x2x128xf32> to vector<2x128xf32>
    %c0_4 = arith.constant 0 : index
    %c0_5 = arith.constant 0 : index
    %c0_6 = arith.constant 0 : index
    %c0_7 = arith.constant 0 : index
    %5 = vector.load %arg4[%c0_4, %c0_5, %c0_6, %c0_7] : memref<1x1x2x128xf32, #tpu.memory_space<vmem>>, vector<1x1x2x128xf32>
    %6 = vector.shape_cast %5 : vector<1x1x2x128xf32> to vector<2x128xf32>
    %c0_8 = arith.constant 0 : index
    %c0_9 = arith.constant 0 : index
    %c0_10 = arith.constant 0 : index
    %c0_11 = arith.constant 0 : index
    %7 = vector.load %arg5[%c0_8, %c0_9, %c0_10, %c0_11] : memref<1x1x1x128xf32, #tpu.memory_space<vmem>>, vector<1x1x1x128xf32>
    %8 = vector.shape_cast %7 : vector<1x1x1x128xf32> to vector<1x128xf32>
    %9 = arith.mulf %4, %6 : vector<2x128xf32>
    %cst = arith.constant dense<0.000000e+00> : vector<128xf32>
    %10 = vector.multi_reduction <add>, %9, %cst [0] : vector<2x128xf32> to vector<128xf32>
    %11 = vector.shape_cast %10 : vector<128xf32> to vector<1x128xf32>
    %12 = arith.addf %8, %11 : vector<1x128xf32>
    %c0_12 = arith.constant 0 : index
    %c0_13 = arith.constant 0 : index
    %c0_14 = arith.constant 0 : index
    %c0_15 = arith.constant 0 : index
    %13 = vector.load %arg5[%c0_12, %c0_13, %c0_14, %c0_15] : memref<1x1x1x128xf32, #tpu.memory_space<vmem>>, vector<1x1x1x128xf32>
    %14 = vector.shape_cast %13 : vector<1x1x1x128xf32> to vector<1x128xf32>
    %15 = vector.shape_cast %12 : vector<1x128xf32> to vector<1x1x1x128xf32>
    tpu.vector_store %arg5[%c0_12, %c0_13, %c0_14, %c0_15], %15 {strides = array<i32>} : memref<1x1x1x128xf32, #tpu.memory_space<vmem>>, vector<1x1x1x128xf32>,
    %c0_16 = arith.constant 0 : index
    %c0_17 = arith.constant 0 : index
    %c0_18 = arith.constant 0 : index
    %c0_19 = arith.constant 0 : index
    %16 = vector.load %arg6[%c0_16, %c0_17, %c0_18, %c0_19] : memref<1x1x1x128xf32, #tpu.memory_space<vmem>>, vector<1x1x1x128xf32>
    %17 = vector.shape_cast %16 : vector<1x1x1x128xf32> to vector<1x128xf32>
    %18 = arith.addf %4, %6 : vector<2x128xf32>
    %cst_20 = arith.constant dense<0.000000e+00> : vector<128xf32>
    %19 = vector.multi_reduction <add>, %18, %cst_20 [0] : vector<2x128xf32> to vector<128xf32>
    %20 = vector.shape_cast %19 : vector<128xf32> to vector<1x128xf32>
    %21 = arith.addf %17, %20 : vector<1x128xf32>
    %c0_21 = arith.constant 0 : index
    %c0_22 = arith.constant 0 : index
    %c0_23 = arith.constant 0 : index
    %c0_24 = arith.constant 0 : index
    %22 = vector.load %arg6[%c0_21, %c0_22, %c0_23, %c0_24] : memref<1x1x1x128xf32, #tpu.memory_space<vmem>>, vector<1x1x1x128xf32>
    %23 = vector.shape_cast %22 : vector<1x1x1x128xf32> to vector<1x128xf32>
    %24 = vector.shape_cast %21 : vector<1x128xf32> to vector<1x1x1x128xf32>
    tpu.vector_store %arg6[%c0_21, %c0_22, %c0_23, %c0_24], %24 {strides = array<i32>} : memref<1x1x1x128xf32, #tpu.memory_space<vmem>>, vector<1x1x1x128xf32>,
    return
  }
  func.func @transform_0(%arg0: i32, %arg1: i32, %arg2: i32) -> (i32, i32, i32, i32) {
    %c1_i32 = arith.constant 1 : i32
    %0 = arith.addi %arg1, %c1_i32 : i32
    %c0_i32 = arith.constant 0 : i32
    %c0_i32_0 = arith.constant 0 : i32
    return %arg0, %0, %arg2, %c0_i32 : i32, i32, i32, i32
  }
  func.func @transform_1(%arg0: i32, %arg1: i32, %arg2: i32) -> (i32, i32, i32, i32) {
    %c0_i32 = arith.constant 0 : i32
    %c0_i32_0 = arith.constant 0 : i32
    return %arg0, %arg1, %arg2, %c0_i32 : i32, i32, i32, i32
  }
  func.func @transform_2(%arg0: i32, %arg1: i32, %arg2: i32) -> (i32, i32, i32, i32) {
    %c0_i32 = arith.constant 0 : i32
    %c0_i32_0 = arith.constant 0 : i32
    %c0_i32_1 = arith.constant 0 : i32
    return %arg0, %arg1, %c0_i32, %c0_i32_0 : i32, i32, i32, i32
  }
  func.func @transform_3(%arg0: i32, %arg1: i32, %arg2: i32) -> (i32, i32, i32, i32) {
    %c0_i32 = arith.constant 0 : i32
    %c0_i32_0 = arith.constant 0 : i32
    %c0_i32_1 = arith.constant 0 : i32
    return %arg0, %arg1, %c0_i32, %c0_i32_0 : i32, i32, i32, i32
  }
}

</mosaic_0001>

<bundles_post_ra>
// kernel: _iou_device.1
= control target key start
LH: loop header
LB: loop body
LE: loop exit
PB: predicated region body
PF: predicated region fallthrough
CT: control target
= control target key end

     0   :  { %s578_s12 = smov 0   ;;  %s580_s13 = smov 0   ;;  %s635_s0 = inlined_call_operand.vmem [shape: f32[2,4,2,128], index: 0, kind: input, shape index: {}]   ;;  %s636_s1 = inlined_call_operand.vmem [shape: f32[2,3,2,128], index: 1, kind: input, shape index: {}]   ;;  %s637_s2 = inlined_call_operand.vmem [shape: f32[2,3,1,128], index: 2, kind: output, shape index: {0}]   ;;  %s638_s3 = inlined_call_operand.vmem [shape: f32[2,3,1,128], index: 3, kind: output, shape index: {1}]  }
   0x1   :  { %s582_s14 = smov 0   ;;  %s584_s15 = smov 0  }
   0x2   :  { %s586_s16 = smov 0  }
   0x3 LB: > { %s29_s17 = sadd.s32 1, %s547_s14  ;;  %s33_s18 = sadd.s32 1, %s551_s15  ;;  %s555_s16 = sphi %s586_s16, %s14_s16   ;;  %s551_s15 = sphi %s584_s15, %s642_s15   ;;  %s547_s14 = sphi %s582_s14, %s641_s14   ;;  %s543_s13 = sphi %s580_s13, %s640_s13   ;;  %s539_s12 = sphi %s578_s12, %s639_s12  }
   0x4   : > { %p31_p0 = scmp.ge.s32.totalorder %s29_s17, 3  ;;  %p469_p1 = scmp.ge.s32.totalorder %s555_s16, 1 }
   0x5   : > { %p197_p2 = scmp.lt.s32.totalorder %s555_s16, 7 }
   0x6   : > { %s644_s17 = smov (%p31_p0, %s29_s17), 0  ;;  %s646_s18 = smov (!%p31_p0, %s33_s18), %s551_s15 }
   0x7   : > { %p198_p3 = pnand %p469_p1, %p197_p2  ;;  %p35_p4 = scmp.ge.s32.totalorder %s646_s18, 2 }
   0x8   : > { %s248_s19 = sadd.s32 (!%p198_p3), 1, %s539_s12  ;;  %p249_p5 = scmp.lt.s32.totalorder (!%p198_p3), %s543_s13, 1  ;;  %v557_v1 = vmov (!%p198_p3), 0.0   ;;  %vm296_vm0 = vcmask (!%p198_p3), 1041408  }
   0x9   : > { %s648_s18 = smov (%p35_p4, %s646_s18), 0  ;;  %201 = sbr.rel (%p198_p3) target bundleno = 41 (0x29), region = 28 }
   0xa   : > { %p251_p6 = scmp.lt.s32.totalorder (!%p198_p3), %s248_s19, 3  ;;  %p263_p7 = scmp.lt.s32.totalorder (!%p198_p3), %s539_s12, 2 }
  0x10   : > { %s650_s13 = smov (!%p249_p5, %s543_s13), 1  ;;  %s652_s19 = smov (!%p251_p6, %s248_s19), 3 }
  0x11   : > { %s470_s20 = sshll.u32 %s650_s13, 2  ;;  %s475_s23 = smul.u32 3, %s650_s13 }
  0x12   : > { %s257_s21 = sadd.s32 %s470_s20, %s652_s19  ;;  %s654_s12 = smov (!%p263_p7, %s539_s12), 2 }
  0x13   : > { %s471_s22 = sshll.u32 %s257_s21, 1  ;;  %s269_s27 = sadd.s32 %s475_s23, %s654_s12 }
  0x14   : > { %s259_s26 = scalar_lea.vmem %s635_s0, %s471_s22  ;;  %s472_s28 = sshll.u32 %s269_s27, 1 }
  0x15   : > { %s278_s4 = scalar_lea.vmem %s637_s2, %s269_s27  ;;  %v292_v0 = vld [vmem:[%s259_s26] sm:$0x3]  ;;  %s271_s7 = scalar_lea.vmem %s636_s1, %s472_s28 }
  0x16   : > { %290 = vst [vmem:[%s278_s4] sm:$0x1] %v557_v1  ;;  %s285_s10 = scalar_lea.vmem %s638_s3, %s269_s27  ;;  %v293_v2 = vld [vmem:[%s271_s7] sm:$0x3] }
  0x17   : > { %291 = vst [vmem:[%s285_s10] sm:$0x1] %v557_v1  ;;  %v295_v3 = vmul.f32 %v293_v2, %v292_v0  ;;  %v307_v4 = vadd.f32 %v293_v2, %v292_v0 }
  0x19   : > { %v297_v5 = vsel %vm296_vm0, %v295_v3, 0.0  ;;  %v308_v6 = vsel %vm296_vm0, %v307_v4, 0.0 }
  0x1a   : > { %v298_v7 = vrot.slane %v297_v5, 4  ;;  %v309_v8 = vrot.slane %v308_v6, 4 }
  0x1c   : > { %v299_v9 = vadd.f32 %v298_v7, %v297_v5  ;;  %v310_v10 = vadd.f32 %v309_v8, %v308_v6 }
  0x1d   : > { %v294_v17 = vld [vmem:[%s278_s4] sm:$0x1] }
  0x1e   : > { %v300_v11 = vrot.slane %v299_v9, 2  ;;  %v311_v12 = vrot.slane %v310_v10, 2  ;;  %v306_v18 = vld [vmem:[%s285_s10] sm:$0x1] }
  0x20   : > { %v301_v13 = vadd.f32 %v300_v11, %v299_v9  ;;  %v312_v14 = vadd.f32 %v311_v12, %v310_v10 }
  0x22   : > { %v302_v15 = vrot.slane %v301_v13, 1  ;;  %v313_v16 = vrot.slane %v312_v14, 1 }
  0x24   : > { %v303_v19 = vadd.f32 %v302_v15, %v301_v13  ;;  %v314_v20 = vadd.f32 %v313_v16, %v312_v14 }
  0x26   : > { %v304_v21 = vadd.f32 %v303_v19, %v294_v17  ;;  %v315_v22 = vadd.f32 %v314_v20, %v306_v18 }
  0x28   : > { %305 = vst [vmem:[%s278_s4] sm:$0x1] %v304_v21  ;;  %316 = vst [vmem:[%s285_s10] sm:$0x1] %v315_v22 }
  0x29 PF: > { %s14_s16 = sadd.s32 1, %s555_s16   ;;  %s639_s12 = smov %s547_s14 }
  0x2a   : > { %p11_p8 = scmp.ge.s32.totalorder %s14_s16, 8   ;;  %s640_s13 = smov %s551_s15 }
  0x2b   : > { %s641_s14 = smov %s644_s17  ;;  %s642_s15 = smov %s648_s18 }
  0x2c   :  { %13 = sbr.rel (!%p11_p8) target bundleno = 3 (0x3), region = 77 }

</bundles_post_ra>
